<compile_context>
chip_gen: v7x
topology: tpu7x:2x2x1
jax: 0.10.0
libtpu: 0.0.40
codegen_flags: <defaults>
</compile_context>

<pallas_src>
import numpy as np
import jax
import jax.numpy as jnp
from jax.experimental import pallas as pl
from jax.experimental.pallas import tpu as pltpu

MIN_VALUE = -0.3
MAX_VALUE = -0.1

# Degree-5 least-squares fit of tanh(tanh(y)) on [MIN_VALUE, MAX_VALUE],
# fitted in the rescaled variable u in [-1, 1] for perfect conditioning.
_POLY_CENTER = 0.5 * (MIN_VALUE + MAX_VALUE)
_POLY_HALF = 0.5 * (MAX_VALUE - MIN_VALUE)
_POLY_INV_HALF = 1.0 / _POLY_HALF
_u_fit = np.linspace(-1.0, 1.0, 4097)
_f_fit = np.tanh(np.tanh(_POLY_CENTER + _POLY_HALF * _u_fit))
_POLY_COEFFS = tuple(float(c) for c in np.polyfit(_u_fit, _f_fit, 5))


def _fused_kernel(x_ref, wb_ref, o_ref):
    # x_ref:  (1, Cin, m_tile)   channels on sublanes, flattened spatial on lanes
    # wb_ref: (Cout, Cin+1)      fused [weight^T | bias] constant block
    # o_ref:  (1, Cout, m_tile)  lane-dense output (m_tile % 128 == 0)
    x = x_ref[0]                            # (Cin, m_tile)
    wb = wb_ref[...]                        # (Cout, Cin+1)
    cin = x.shape[0]

    # Cin=3 contraction as full-vreg VPU broadcast FMAs (no MXU).
    # TODO(synk): stride-0 sublane loads (pl.ds(ci, cout, stride=0)) would keep
    # the replication on the vld path; skipped since the kernel is DMA-bound.
    acc = wb[:, 0:1] * x[0:1, :]            # (Cout, m_tile)
    for ci in range(1, cin):
        acc = acc + wb[:, ci:ci + 1] * x[ci:ci + 1, :]
    y = acc + wb[:, cin:cin + 1]            # conv-transpose bias

    # torch.clamp_min / torch.clamp_max
    y = jnp.minimum(jnp.maximum(y, MIN_VALUE), MAX_VALUE)

    # tanh(tanh(y)) on the clamped interval as a degree-5 polynomial
    # (Horner, 6 VPU FMAs) -> no EUP pushes.  Max abs error vs the exact
    # composition is ~1e-7, far inside the 1e-5 tolerance.  Garbage lanes of a
    # masked tail block may produce NaN/Inf here; they are never stored.
    u = (y - _POLY_CENTER) * _POLY_INV_HALF
    r = _POLY_COEFFS[0] * u + _POLY_COEFFS[1]
    for c in _POLY_COEFFS[2:]:
        r = r * u + c
    o_ref[0] = r.astype(o_ref.dtype)


def model_forward(x_nchw, weight_ic_oc, bias, *, m_tile_max=131072):
    """x_nchw: (N, 3, H, W) f32; weight_ic_oc: (Cin=3, Cout=8); bias: (8,).
    Returns (N, 8, H-2, W-2) f32, matching the PyTorch module."""
    n, cin, h, w = x_nchw.shape
    ho, wo = h - 2, w - 2
    assert ho > 0 and wo > 0, "spatial dims too small for padding=1 crop"
    cout = weight_ic_oc.shape[1]

    # Border crop (XLA slice) then a free reshape: channels stay ahead of
    # spatial, so no transpose is needed on either side of the kernel.
    # TODO(synk): for wide images (W >~ 512) fold the crop into the kernel via
    # an H-row grid to remove this extra HBM pass; for small W the lane-dense
    # flattening below is the better trade.
    x_crop = x_nchw[:, :, 1:-1, 1:-1]              # (N, Cin, Ho, Wo)
    m = ho * wo
    x_flat = x_crop.reshape(n, cin, m)             # (N, Cin, M)

    # Lane-dense tile over M (multiple of 128).  No input pad / output trim:
    # Pallas masks the partial last block automatically.
    m_tile = min(pl.cdiv(m, 128) * 128, m_tile_max)
    if n == 1 and m > 128:
        # Keep >= 2 parallel grid steps so both v7x TensorCores get work.
        m_tile = min(m_tile, pl.cdiv(pl.cdiv(m, 2), 128) * 128)
    num_m_tiles = pl.cdiv(m, m_tile)

    # Fuse weight (Cout, Cin) and bias (Cout, 1) into one constant block.
    wb = jnp.concatenate(
        [weight_ic_oc.T.astype(jnp.float32),
         bias.reshape(cout, 1).astype(jnp.float32)], axis=1)   # (Cout, Cin+1)

    out_flat = pl.pallas_call(
        _fused_kernel,
        out_shape=jax.ShapeDtypeStruct((n, cout, m), jnp.float32),
        grid_spec=pltpu.PrefetchScalarGridSpec(
            num_scalar_prefetch=0,
            grid=(n, num_m_tiles),
            in_specs=[
                pl.BlockSpec((1, cin, m_tile), lambda i, j: (i, 0, j)),
                pl.BlockSpec((cout, cin + 1), lambda i, j: (0, 0)),
            ],
            out_specs=pl.BlockSpec((1, cout, m_tile), lambda i, j: (i, 0, j)),
        ),
        compiler_params=pltpu.CompilerParams(
            dimension_semantics=("parallel", "parallel"),
            vmem_limit_bytes=32 * 1024 * 1024,
        ),
    )(x_flat, wb)

    # Reshape back to NCHW is free (no transpose, no trim needed).
    return out_flat.reshape(n, cout, ho, wo)


if __name__ == "__main__":
    key = jax.random.PRNGKey(0)
    kx, kw, kb, kx2 = jax.random.split(key, 4)

    # ConvTranspose2d(3, 8, 1) parameters (PyTorch weight (3, 8, 1, 1) squeezed).
    cin, cout = 3, 8
    bound = 1.0 / (cin ** 0.5)
    weight = jax.random.uniform(kw, (cin, cout), jnp.float32, -bound, bound)
    bias = jax.random.uniform(kb, (cout,), jnp.float32, -bound, bound)

    def reference(x):
        xc = x[:, :, 1:-1, 1:-1]
        r = jnp.einsum("nchw,co->nohw", xc, weight) + bias[None, :, None, None]
        return jnp.tanh(jnp.tanh(jnp.clip(r, MIN_VALUE, MAX_VALUE)))

    # Small valid input (the module's repro shape (1,3,1,5) is degenerate).
    x = jax.random.normal(kx, (2, 3, 18, 18), jnp.float32)
    out = jax.block_until_ready(model_forward(x, weight, bias))
    assert out.shape == (2, 8, 16, 16)
    assert jnp.allclose(out, reference(x), atol=1e-5, rtol=1e-5), "mismatch (full tiles)"

    # Second shape exercises the masked tail block (M = 18*18 = 324, not a
    # multiple of 128) and the n==1 v7x two-tile grid split.
    x_tail = jax.random.normal(kx2, (1, 3, 20, 20), jnp.float32)
    out_tail = jax.block_until_ready(model_forward(x_tail, weight, bias))
    assert out_tail.shape == (1, 8, 18, 18)
    assert jnp.allclose(out_tail, reference(x_tail), atol=1e-5, rtol=1e-5), "mismatch (tail tile)"

    print("KERNEL_OK")
</pallas_src>

<mosaic_0001>
module attributes {stable_mosaic.version = 11 : i64} {
  func.func @_fused_kernel(%arg0: i32, %arg1: i32, %arg2: memref<1x3x256xf32, #tpu.memory_space<vmem>>, %arg3: memref<8x4xf32, #tpu.memory_space<vmem>>, %arg4: memref<1x8x256xf32, #tpu.memory_space<vmem>>) attributes {dimension_semantics = [#tpu.dimension_semantics<parallel>, #tpu.dimension_semantics<parallel>], iteration_bounds = array<i64: 2, 1>, scalar_prefetch = 0 : i64, scratch_operands = 0 : i64, tpu.core_type = #tpu.core_type<tc>, window_params = [{transform_indices = @transform_0, window_bounds = array<i64: 1, 3, 256>}, {pipeline_mode = #tpu.pipeline_mode<synchronous>, transform_indices = @transform_1, window_bounds = array<i64: 8, 4>}, {transform_indices = @transform_2, window_bounds = array<i64: 1, 8, 256>}]} {
    %c0 = arith.constant 0 : index
    %c0_0 = arith.constant 0 : index
    %c0_1 = arith.constant 0 : index
    %0 = vector.load %arg2[%c0, %c0_0, %c0_1] : memref<1x3x256xf32, #tpu.memory_space<vmem>>, vector<1x3x256xf32>
    %1 = vector.shape_cast %0 : vector<1x3x256xf32> to vector<3x256xf32>
    %c0_2 = arith.constant 0 : index
    %c0_3 = arith.constant 0 : index
    %2 = vector.load %arg3[%c0_2, %c0_3] : memref<8x4xf32, #tpu.memory_space<vmem>>, vector<8x4xf32>
    %3 = vector.extract_strided_slice %2 {offsets = [0, 0], sizes = [8, 1], strides = [1, 1]} : vector<8x4xf32> to vector<8x1xf32>
    %4 = vector.extract_strided_slice %1 {offsets = [0, 0], sizes = [1, 256], strides = [1, 1]} : vector<3x256xf32> to vector<1x256xf32>
    %5 = vector.broadcast %3 : vector<8x1xf32> to vector<8x256xf32>
    %6 = vector.broadcast %4 : vector<1x256xf32> to vector<8x256xf32>
    %7 = arith.mulf %5, %6 : vector<8x256xf32>
    %8 = vector.extract_strided_slice %2 {offsets = [0, 1], sizes = [8, 1], strides = [1, 1]} : vector<8x4xf32> to vector<8x1xf32>
    %9 = vector.extract_strided_slice %1 {offsets = [1, 0], sizes = [1, 256], strides = [1, 1]} : vector<3x256xf32> to vector<1x256xf32>
    %10 = vector.broadcast %8 : vector<8x1xf32> to vector<8x256xf32>
    %11 = vector.broadcast %9 : vector<1x256xf32> to vector<8x256xf32>
    %12 = arith.mulf %10, %11 : vector<8x256xf32>
    %13 = arith.addf %7, %12 : vector<8x256xf32>
    %14 = vector.extract_strided_slice %2 {offsets = [0, 2], sizes = [8, 1], strides = [1, 1]} : vector<8x4xf32> to vector<8x1xf32>
    %15 = vector.extract_strided_slice %1 {offsets = [2, 0], sizes = [1, 256], strides = [1, 1]} : vector<3x256xf32> to vector<1x256xf32>
    %16 = vector.broadcast %14 : vector<8x1xf32> to vector<8x256xf32>
    %17 = vector.broadcast %15 : vector<1x256xf32> to vector<8x256xf32>
    %18 = arith.mulf %16, %17 : vector<8x256xf32>
    %19 = arith.addf %13, %18 : vector<8x256xf32>
    %20 = vector.extract_strided_slice %2 {offsets = [0, 3], sizes = [8, 1], strides = [1, 1]} : vector<8x4xf32> to vector<8x1xf32>
    %21 = vector.broadcast %20 : vector<8x1xf32> to vector<8x256xf32>
    %22 = arith.addf %19, %21 : vector<8x256xf32>
    %cst = arith.constant -3.000000e-01 : f32
    %23 = vector.broadcast %cst : f32 to vector<8x256xf32>
    %24 = arith.maximumf %22, %23 : vector<8x256xf32>
    %cst_4 = arith.constant -1.000000e-01 : f32
    %25 = vector.broadcast %cst_4 : f32 to vector<8x256xf32>
    %26 = arith.minimumf %24, %25 : vector<8x256xf32>
    %cst_5 = arith.constant -2.000000e-01 : f32
    %27 = vector.broadcast %cst_5 : f32 to vector<8x256xf32>
    %28 = arith.subf %26, %27 : vector<8x256xf32>
    %cst_6 = arith.constant 1.000000e+01 : f32
    %29 = vector.broadcast %cst_6 : f32 to vector<8x256xf32>
    %30 = arith.mulf %28, %29 : vector<8x256xf32>
    %cst_7 = arith.constant 2.15759292E-6 : f32
    %31 = vector.broadcast %cst_7 : f32 to vector<8x256xf32>
    %32 = arith.mulf %31, %30 : vector<8x256xf32>
    %cst_8 = arith.constant -4.52887944E-5 : f32
    %33 = vector.broadcast %cst_8 : f32 to vector<8x256xf32>
    %34 = arith.addf %32, %33 : vector<8x256xf32>
    %35 = arith.mulf %34, %30 : vector<8x256xf32>
    %cst_9 = arith.constant -4.56041918E-4 : f32
    %36 = vector.broadcast %cst_9 : f32 to vector<8x256xf32>
    %37 = arith.addf %35, %36 : vector<8x256xf32>
    %38 = arith.mulf %37, %30 : vector<8x256xf32>
    %cst_10 = arith.constant 0.00355594815 : f32
    %39 = vector.broadcast %cst_10 : f32 to vector<8x256xf32>
    %40 = arith.addf %38, %39 : vector<8x256xf32>
    %41 = arith.mulf %40, %30 : vector<8x256xf32>
    %cst_11 = arith.constant 0.0924554914 : f32
    %42 = vector.broadcast %cst_11 : f32 to vector<8x256xf32>
    %43 = arith.addf %41, %42 : vector<8x256xf32>
    %44 = arith.mulf %43, %30 : vector<8x256xf32>
    %cst_12 = arith.constant -0.194851577 : f32
    %45 = vector.broadcast %cst_12 : f32 to vector<8x256xf32>
    %46 = arith.addf %44, %45 : vector<8x256xf32>
    %c0_13 = arith.constant 0 : index
    %c0_14 = arith.constant 0 : index
    %c0_15 = arith.constant 0 : index
    %47 = vector.load %arg4[%c0_13, %c0_14, %c0_15] : memref<1x8x256xf32, #tpu.memory_space<vmem>>, vector<1x8x256xf32>
    %48 = vector.shape_cast %47 : vector<1x8x256xf32> to vector<8x256xf32>
    %49 = vector.shape_cast %46 : vector<8x256xf32> to vector<1x8x256xf32>
    tpu.vector_store %arg4[%c0_13, %c0_14, %c0_15], %49 {strides = array<i32>} : memref<1x8x256xf32, #tpu.memory_space<vmem>>, vector<1x8x256xf32>,
    return
  }
  func.func @transform_0(%arg0: i32, %arg1: i32) -> (i32, i32, i32) {
    %c0_i32 = arith.constant 0 : i32
    %c0_i32_0 = arith.constant 0 : i32
    return %arg0, %c0_i32, %arg1 : i32, i32, i32
  }
  func.func @transform_1(%arg0: i32, %arg1: i32) -> (i32, i32) {
    %c0_i32 = arith.constant 0 : i32
    %c0_i32_0 = arith.constant 0 : i32
    %c0_i32_1 = arith.constant 0 : i32
    return %c0_i32, %c0_i32_0 : i32, i32
  }
  func.func @transform_2(%arg0: i32, %arg1: i32) -> (i32, i32, i32) {
    %c0_i32 = arith.constant 0 : i32
    %c0_i32_0 = arith.constant 0 : i32
    return %arg0, %c0_i32, %arg1 : i32, i32, i32
  }
}

</mosaic_0001>

<bundles_post_ra>
// kernel: tpu_custom_call.1
= control target key start
LH: loop header
LB: loop body
LE: loop exit
PB: predicated region body
PF: predicated region fallthrough
CT: control target
= control target key end

     0   :  { %7 = vsyncpa [#allocation3], 0  ;;  %s678_s0 = inlined_call_operand.vmem [shape: f32[2,3,256], index: 0, kind: input, shape index: {}]   ;;  %s679_s1 = inlined_call_operand.vmem [shape: f32[8,4], index: 1, kind: input, shape index: {}]   ;;  %s680_s2 = inlined_call_operand.hbm [shape: f32[2,8,256], index: 2, kind: output, shape index: {}]  }
   0x1   :  { %9 = vsyncpa [#allocation3 + $0x1], 0  ;;  %s563_s9 = smov 0   ;;  %s565_s10 = smov 0  }
   0x2   :  { %s567_s11 = smov 0   ;;  %s569_s12 = smov 0  }
   0x3   :  { %s571_s13 = smov 0   ;;  %s573_s14 = smov 0  }
   0x4 LB: > { %s382_s15 = sadd.s32 4294967295, %s541_s14   ;;  %s383_s16 = sadd.s32 4294967294, %s541_s14   ;;  %s541_s14 = sphi %s573_s14, %s15_s14   ;;  %s537_s13 = sphi %s571_s13, %s687_s13   ;;  %s533_s12 = sphi %s569_s12, %s686_s12   ;;  %s529_s11 = sphi %s567_s11, %s685_s11   ;;  %s525_s10 = sphi %s565_s10, %s684_s10   ;;  %s521_s9 = sphi %s563_s9, %s683_s9  }
   0x5   : > { %s27_s17 = sadd.s32 1, %s537_s13  ;;  %s85_s18 = sadd.s32 1, %s529_s11 }
   0x6   : > { %p29_p0 = scmp.ge.s32.totalorder %s27_s17, 2  ;;  %p95_p1 = scmp.ne.s32.totalorder %s529_s11, %s525_s10 }
   0x7   : > { %p96_p2 = scmp.eq.s32.totalorder %s382_s15, 1  ;;  %p101_p3 = scmp.ne.s32.totalorder %s525_s10, %s521_s9 }
   0x8   : > { %s689_s17 = smov (%p29_p0, %s27_s17), 0  ;;  %p102_p5 = scmp.eq.s32.totalorder %s383_s16, 1 }
   0x9   : > { %p603_p4 = por %p96_p2, %p95_p1  ;;  %s80_s20 = ssub.s32 %s537_s13, %s689_s17 }
   0xa   : > { %p386_p6 = scmp.ge.s32.totalorder %s541_s14, 1  ;;  %p83_p7 = scmp.eq.s32.totalorder %s80_s20, 0 }
   0xb   : > { %p610_p8 = por %p102_p5, %p101_p3  ;;  %p136_p9 = scmp.lt.s32.totalorder %s541_s14, 3 }
   0xc   : > { %s616_s22 = scalar_select %p83_p7, %s529_s11, %s85_s18  }
   0xd   : > { %p137_p10 = pnand %p386_p6, %p136_p9 }
   0xe   : > { %v174_v0 = vld [vmem:[%s679_s1] sm:$0xff] (!%p137_p10)  ;;  %v543_v1 = vmov (!%p137_p10), 0   ;;  %v544_v2 = vmov (!%p137_p10), 2   ;;  %v545_v3 = vmov (!%p137_p10), 1   ;;  %v546_v4 = vmov (!%p137_p10), 3   ;;  %p163_p11 = scmp.lt.s32.totalorder (!%p137_p10), %s533_s12, 1 }
   0xf   : > { %140 = sbr.rel (%p137_p10) target bundleno = 199 (0xc7), region = 28  ;;  %458 = vset.pattern.permute.xlu0 (!%p137_p10), %v543_v1  ;;  %460 = vset.pattern.permute.xlu1 (!%p137_p10), %v544_v2  ;;  %v181_v5 = vlaneseq (!%p137_p10)  ;;  %s159_s30 = sand.u32 (!%p137_p10), 1, %s525_s10  }
  0x10   : > { %177 = vperm.xlu0 (!%p137_p10), %458, %v174_v0   ;;  %228 = vperm.xlu1 (!%p137_p10), %460, %v174_v0   ;;  %s387_s3 = sshll.u32 (!%p137_p10), %s159_s30, 4  ;;  %s398_s4 = sshll.u32 (!%p137_p10), %s533_s12, 8 }
  0x11   : > { %v182_v6 = vshrl.u32 (!%p137_p10), %v181_v5, 7  ;;  %s161_s5 = scalar_lea.vmem (!%p137_p10), [#allocation2], %s387_s3  ;;  %s631_s15 = scalar_lea.hbm (!%p137_p10), %s680_s2, %s398_s4 }
  0x12   : > { %s306_s6 = sshll.u32 (!%p137_p10), %s161_s5, 4  ;;  %s290_s16 = scalar_lea.sflag (!%p137_p10), [#allocation3], %s159_s30  ;;  %s633_s6 = int_to_ptr.vmem [resolvable:$true] %s306_s6 }
  0x13   : > { %v183_v7 = vsub.s32 (!%p137_p10), 0, %v182_v6  ;;  %v187_v8 = vsub.s32 (!%p137_p10), 4, %v182_v6  ;;  %v207_v10 = vsub.s32 (!%p137_p10), 1, %v182_v6  ;;  %v211_v11 = vsub.s32 (!%p137_p10), 5, %v182_v6  ;;  %s547_s18 = smov (!%p137_p10), [#allocation2]  }
  0x14   : > { %459 = vset.pattern.permute.xlu0 (!%p137_p10), %v545_v3  ;;  %461 = vset.pattern.permute.xlu1 (!%p137_p10), %v546_v4  ;;  %v233_v12 = vsub.s32 (!%p137_p10), 2, %v182_v6  ;;  %v237_v13 = vsub.s32 (!%p137_p10), 6, %v182_v6  ;;  %s467_s20 = sshll.u32 (!%p137_p10), %s547_s18, 4  ;;  %s468_s20 = int_to_ptr.vmem [resolvable:$false] %s467_s20 }
  0x15   : > { %202 = vperm.xlu0 (!%p137_p10), %459, %v174_v0   ;;  %254 = vperm.xlu1 (!%p137_p10), %461, %v174_v0   ;;  %s469_s23 = scalar_lea.vmem (!%p137_p10), %s468_s20, 512  ;;  %p470_p1 = scmp.lt.s32.totalorder (!%p137_p10), %s633_s6, %s468_s20 }
  0x16   : > { %s164_s25 = scalar_select %p163_p11, %s533_s12, 1 }
  0x17   : > { %s463_s12 = scalar_lea.vmem %s633_s6, 256 }
  0x18   : > { %s397_s26 = sshll.u32 %s164_s25, 3  ;;  %p464_p12 = scmp.ne.s32.totalorder %s633_s6, %s463_s12 }
  0x19   : > { %462 = vset.pattern.permute.xlu0 %v546_v4  ;;  %s170_s29 = scalar_lea.vmem %s678_s0, %s397_s26  ;;  %p471_p2 = scmp.lt.s32.totalorder %s469_s23, %s463_s12 }
  0x1a   : > { %v173_v9 = vld [vmem:[%s170_s29] sm:$0x77]  ;;  %p465_p13 = pnand %p464_p12, %p603_p4 }
  0x1b   : > { %v184_v14 = vrot.slane %v173_v9, %v183_v7  ;;  %v188_v15 = vrot.slane %v173_v9, %v187_v8  ;;  %v208_v16 = vrot.slane %v173_v9, %v207_v10  ;;  %v212_v17 = vrot.slane %v173_v9, %v211_v11  ;;  %p472_p3 = por %p471_p2, %p470_p1 }
  0x1c   : > { %v234_v18 = vrot.slane %v173_v9, %v233_v12  ;;  %v238_v19 = vrot.slane %v173_v9, %v237_v13  ;;  %p466_p0 = pneg %p465_p13 }
  0x1d   : > { %v194_v21 = vrot.slane %v184_v14, %v183_v7  ;;  %v198_v22 = vrot.slane %v188_v15, %v183_v7  ;;  %v218_v23 = vrot.slane %v208_v16, %v207_v10  ;;  %v222_v24 = vrot.slane %v212_v17, %v207_v10 }
  0x1e   : > { %v244_v25 = vrot.slane %v234_v18, %v233_v12  ;;  %v248_v26 = vrot.slane %v238_v19, %v233_v12  ;;  %p473_p5 = pnand %p472_p3, %p466_p0 }
  0x8f   : > { %v178_v20 = vpop.permute.xlu0 %177  ;;  %v229_v27 = vpop.permute.xlu1 %228 }
  0x90   : > { %v199_v28 = vmul.f32 %v194_v21, %v178_v20  ;;  %v200_v29 = vmul.f32 %v198_v22, %v178_v20  ;;  %v249_v33 = vmul.f32 %v244_v25, %v229_v27  ;;  %v250_v34 = vmul.f32 %v248_v26, %v229_v27 }
  0x94   : > { %v203_v30 = vpop.permute.xlu0 %202  ;;  %v255_v37 = vpop.permute.xlu1 %254 }
  0x95   : > { %v223_v31 = vmul.f32 %v218_v23, %v203_v30  ;;  %v224_v32 = vmul.f32 %v222_v24, %v203_v30 }
  0x97   : > { %v225_v35 = vadd.f32 %v223_v31, %v199_v28  ;;  %v226_v36 = vadd.f32 %v224_v32, %v200_v29 }
  0x99   : > { %v251_v38 = vadd.f32 %v249_v33, %v225_v35  ;;  %v252_v39 = vadd.f32 %v250_v34, %v226_v36 }
  0x9b   : > { %v257_v40 = vadd.f32 %v255_v37, %v251_v38  ;;  %v258_v41 = vadd.f32 %v255_v37, %v252_v39 }
  0x9d   : > { %v259_v42 = vmax.f32 %v257_v40, -0.3  ;;  %v260_v43 = vmax.f32 %v258_v41, -0.3 }
  0x9f   : > { %v261_v44 = vmin.f32 %v259_v42, -0.1  ;;  %v262_v45 = vmin.f32 %v260_v43, -0.1 }
  0xa1   : > { %v390_v46 = vadd.f32 0.2, %v261_v44  ;;  %v391_v47 = vadd.f32 0.2, %v262_v45 }
  0xa3   : > { %v265_v48 = vmul.f32 10.0, %v390_v46  ;;  %v266_v49 = vmul.f32 10.0, %v391_v47 }
  0xa5   : > { %v267_v50 = vmul.f32 2.157593e-06, %v265_v48  ;;  %v268_v51 = vmul.f32 2.157593e-06, %v266_v49 }
  0xa7   : > { %v269_v52 = vadd.f32 -4.5288794e-05, %v267_v50  ;;  %v270_v53 = vadd.f32 -4.5288794e-05, %v268_v51 }
  0xa9   : > { %v271_v54 = vmul.f32 %v269_v52, %v265_v48  ;;  %v272_v55 = vmul.f32 %v270_v53, %v266_v49 }
  0xab   : > { %v273_v56 = vadd.f32 -0.00045604192, %v271_v54  ;;  %v274_v57 = vadd.f32 -0.00045604192, %v272_v55 }
  0xad   : > { %v275_v58 = vmul.f32 %v273_v56, %v265_v48  ;;  %v276_v59 = vmul.f32 %v274_v57, %v266_v49 }
  0xaf   : > { %v277_v60 = vadd.f32 0.0035559481, %v275_v58  ;;  %v278_v61 = vadd.f32 0.0035559481, %v276_v59 }
  0xb1   : > { %v279_v62 = vmul.f32 %v277_v60, %v265_v48  ;;  %v280_v63 = vmul.f32 %v278_v61, %v266_v49 }
  0xb3   : > { %v281_v0 = vadd.f32 0.09245549, %v279_v62  ;;  %v282_v1 = vadd.f32 0.09245549, %v280_v63 }
  0xb5   : > { %v283_v2 = vmul.f32 %v281_v0, %v265_v48  ;;  %v284_v3 = vmul.f32 %v282_v1, %v266_v49 }
  0xb7   : > { %v285_v4 = vadd.f32 -0.19485158, %v283_v2  ;;  %v286_v5 = vadd.f32 -0.19485158, %v284_v3 }
  0xb9   : > { %287 = vst [vmem:[%s161_s5] sm:$0xff] %v285_v4  ;;  %288 = vst [vmem:[%s161_s5 + $0x8] sm:$0xff] %v286_v5 }
  0xba   : > { %476 = shalt.err (!%p473_p5)
}
  0xbb   : > { %s477_s24 = scalar_lea.hbm %s631_s15, 256  ;;  %s481_s27 = scalar_lea.hbm %s680_s2, 512 }
  0xbc   : > { %p478_p6 = scmp.ne.s32.totalorder %s631_s15, %s477_s24  ;;  %p482_p10 = scmp.lt.u32.totalorder %s631_s15, %s680_s2 }
  0xbd   : > { %p483_p11 = scmp.lt.u32.totalorder %s481_s27, %s477_s24  ;;  %p485_p13 = scmp.lt.u32.totalorder %s477_s24, %s631_s15 }
  0xbe   : > { %p479_p7 = pnand %p478_p6, %p603_p4 }
  0xbf   : > { %p484_p12 = por %p483_p11, %p482_p10 }
  0xc0   : > { %p480_p9 = pneg %p479_p7 }
  0xc1   : > { %p486_p0 = por %p485_p13, %p484_p12 }
  0xc3   : > { %p487_p1 = pnand %p486_p0, %p480_p9 }
  0xc5   : > { %490 = shalt.err (!%p487_p1)
}
  0xc6   : > { %399 = dma.vmem_to_hbm [thread:$0]  (%p603_p4), %s633_s6, 256, %s631_s15, %s290_s16  }
  0xc7 PF: > { %p405_p2 = scmp.ge.s32.totalorder %s541_s14, 2  ;;  %s318_s30 = sand.u32 1, %s521_s9  }
  0xc8   : > { %s319_s3 = scalar_lea.sflag [#allocation3], %s318_s30 }
  0xc9   : > { %p402_p3 = pnand %p405_p2, %p610_p8 }
  0xcb   : > { %516 = dma.done.wait (!%p402_p3), %s319_s3, 256  }
  0xcc   : > { %518 = vsyncadd (!%p402_p3), %s319_s3, 4294967040  ;;  %s15_s14 = sadd.s32 1, %s541_s14   ;;  %s683_s9 = smov %s525_s10 }
  0xcd   : > { %p12_p5 = scmp.ge.s32.totalorder %s15_s14, 4   ;;  %s684_s10 = smov %s529_s11 }
  0xce   : > { %s685_s11 = smov %s616_s22  ;;  %s686_s12 = smov %s537_s13 }
  0xcf   : > { %s687_s13 = smov %s689_s17  ;;  %14 = sbr.rel (!%p12_p5) target bundleno = 4 (0x4), region = 63 }
  0xd6   :  { %324 = vsyncpa [#allocation3], 1 }
  0xd7   :  { %326 = vsyncpa [#allocation3 + $0x1], 1 }

</bundles_post_ra>
